<compile_context>
chip_gen: v7x
topology: tpu7x:2x2x1
jax: 0.10.0
libtpu: 0.0.40
codegen_flags: <defaults>
</compile_context>

<pallas_src>
import functools

import jax
import jax.numpy as jnp
from jax.experimental import pallas as pl
from jax.experimental.pallas import tpu as pltpu

OUT_PAD = 128  # lane-dense padded width for the 3-way softmax output


def _round_up(x, m):
    return ((x + m - 1) // m) * m


def _agent_kernel(N,
                  dyn_ref, static_ref,
                  w1p, b1p, w2p, b2p, w3p, b3p,      # Phi: 3 -> 120 -> 100 -> 80
                  w1r, b1r, w2r, b2r,                # Rho: 80 -> 60 -> 60
                  w_rq, b_rq, w1q_s,                 # fused Rho.fc3 @ Q.fc1 (60->200) + static branch (3->200)
                  w2q, b2q, w3q, b3q,                # Q: 200 -> 100 -> 3 (padded to 128)
                  out_ref):
    f32 = jnp.float32
    tb = dyn_ref.shape[1]                                    # batch rows in this tile

    # ---- Phi: per-set-element MLP on all N*tb rows at once (big M for the MXU) ----
    x = dyn_ref[...].reshape(N * tb, 3)                      # leading-dim merge, layout-preserving
    h = jnp.maximum(jnp.dot(x, w1p[...], preferred_element_type=f32) + b1p[...], 0.0)
    h = jnp.maximum(jnp.dot(h, w2p[...], preferred_element_type=f32) + b2p[...], 0.0)
    h = jnp.maximum(jnp.dot(h, w3p[...], preferred_element_type=f32) + b3p[...], 0.0)
    # sum over the set dimension = N-1 elementwise adds over the leading axis (no XLU reduce)
    phi = jnp.sum(h.reshape(N, tb, h.shape[-1]), axis=0)     # (tb, 80)

    # ---- Rho fc1/fc2 (fc3 is folded into the Q branch below, it has no ReLU) ----
    r = jnp.maximum(jnp.dot(phi, w1r[...], preferred_element_type=f32) + b1r[...], 0.0)
    r = jnp.maximum(jnp.dot(r,   w2r[...], preferred_element_type=f32) + b2r[...], 0.0)  # (tb, 60)

    # ---- Q: concat-free, Rho.fc3-fused first layer (two MXU dots into one accumulator) ----
    q = (jnp.dot(r, w_rq[...], preferred_element_type=f32)
         + jnp.dot(static_ref[...], w1q_s[...], preferred_element_type=f32)
         + b_rq[...])
    q = jnp.maximum(q, 0.0)                                               # (tb, 200)
    q = jnp.maximum(jnp.dot(q, w2q[...], preferred_element_type=f32) + b2q[...], 0.0)
    # last layer padded to 128 output columns; pad columns carry bias -1e30 -> softmax 0
    q = jnp.dot(q, w3q[...], preferred_element_type=f32) + b3q[...]       # (tb, 128)

    # ---- softmax over the (padded) logit axis; lane-dense unmasked store ----
    q = q - jnp.max(q, axis=1, keepdims=True)
    e = jnp.exp(q)
    out_ref[...] = e * pl.reciprocal(jnp.sum(e, axis=1, keepdims=True), approx=True)


def prepare_params(params):
    """Split / fold Q.fc1, fold Rho.fc3, pad the last Q layer to 128 lane-dense columns."""
    (w1p, b1p, w2p, b2p, w3p, b3p,
     w1r, b1r, w2r, b2r, w3r, b3r,
     w1q, b1q, w2q, b2q, w3q, b3q) = params
    w1q_r = w1q[:40, :]                                      # (40, 200) — rho part of the concat
    w1q_s = w1q[40:, :]                                      # (3, 200)  — static part of the concat
    # Rho.fc3 has no activation before Q.fc1, so fold the two linear maps exactly:
    w_rq = w3r @ w1q_r                                       # (60, 200)
    b_rq = b3r @ w1q_r + b1q                                 # (1, 200)
    w3q_pad = jnp.zeros((w3q.shape[0], OUT_PAD), jnp.float32).at[:, :3].set(w3q)
    b3q_pad = jnp.full((1, OUT_PAD), -1e30, jnp.float32).at[:, :3].set(b3q)
    return (w1p, b1p, w2p, b2p, w3p, b3p,
            w1r, b1r, w2r, b2r,
            w_rq, b_rq, w1q_s,
            w2q, b2q, w3q_pad, b3q_pad)


def agent_forward(dyn, static, params, *, tile_b=None):
    """dyn: (B, N, 3) f32, static: (B, 3) f32 -> (B, 3) f32 softmax probabilities."""
    B, N, F = dyn.shape
    assert F == 3 and static.shape == (B, 3)

    # set-dim first so the in-kernel sum is over the leading axis
    dyn_t = jnp.transpose(dyn.astype(jnp.float32), (1, 0, 2))   # (N, B, 3)
    static = static.astype(jnp.float32)

    # batch tile: large enough that the Phi matmul sees M = N * tile_b rows per step
    # and per-step overhead amortizes, small enough to stay far below the scoped VMEM
    # limit on all of v5e / v6e / v7x.
    if tile_b is None:
        tile_b = min(512, _round_up(B, 8))
    tile_b = max(8, _round_up(tile_b, 8))
    b_pad = _round_up(B, tile_b)
    if b_pad != B:
        dyn_t = jnp.pad(dyn_t, ((0, 0), (0, b_pad - B), (0, 0)))
        static = jnp.pad(static, ((0, b_pad - B), (0, 0)))
    num_tiles = b_pad // tile_b

    prep = prepare_params(params)
    inputs = [dyn_t, static] + list(prep)

    def const_spec(arr):
        nd = arr.ndim
        return pl.BlockSpec(arr.shape, lambda i, _nd=nd: (0,) * _nd)   # VMEM-resident weights

    in_specs = [
        pl.BlockSpec((N, tile_b, 3), lambda i: (0, i, 0)),   # dyn tile
        pl.BlockSpec((tile_b, 3), lambda i: (i, 0)),         # static tile
    ] + [const_spec(p) for p in prep]

    out_spec = pl.BlockSpec((tile_b, OUT_PAD), lambda i: (i, 0))

    out = pl.pallas_call(
        functools.partial(_agent_kernel, N),
        out_shape=jax.ShapeDtypeStruct((b_pad, OUT_PAD), jnp.float32),
        grid_spec=pltpu.PrefetchScalarGridSpec(
            num_scalar_prefetch=0,
            grid=(num_tiles,),
            in_specs=in_specs,
            out_specs=out_spec,
        ),
        compiler_params=pltpu.CompilerParams(
            dimension_semantics=("parallel",),               # megacore-shardable batch axis
            vmem_limit_bytes=32 * 1024 * 1024,               # safe on v5e/v6e/v7x
        ),
    )(*inputs)

    return out[:B, :3]


def init_params(key):
    """Deterministic parameter init; weights stored as (in, out), biases (1, out)."""
    sizes = [
        (3, 120), (120, 100), (100, 80),     # Phi
        (80, 60), (60, 60), (60, 40),        # Rho
        (43, 200), (200, 100), (100, 3),     # Q
    ]
    params = []
    for (fan_in, fan_out) in sizes:
        key, kw, kb = jax.random.split(key, 3)
        bound = 1.0 / jnp.sqrt(fan_in)
        w = jax.random.uniform(kw, (fan_in, fan_out), jnp.float32, -bound, bound)
        b = jax.random.uniform(kb, (1, fan_out), jnp.float32, -bound, bound)
        params.append(w)
        params.append(b)
    return params


def reference_forward(dyn, static, params):
    """Pure-JAX reference mirroring the PyTorch semantics (unfused, unpadded)."""
    (w1p, b1p, w2p, b2p, w3p, b3p,
     w1r, b1r, w2r, b2r, w3r, b3r,
     w1q, b1q, w2q, b2q, w3q, b3q) = params
    B, N, _ = dyn.shape
    x = dyn.reshape(B * N, 3)
    h = jax.nn.relu(x @ w1p + b1p)
    h = jax.nn.relu(h @ w2p + b2p)
    h = jax.nn.relu(h @ w3p + b3p)
    phi = h.reshape(B, N, -1).sum(axis=1)
    r = jax.nn.relu(phi @ w1r + b1r)
    r = jax.nn.relu(r @ w2r + b2r)
    r = r @ w3r + b3r
    cat = jnp.concatenate([r, static], axis=1)
    q = jax.nn.relu(cat @ w1q + b1q)
    q = jax.nn.relu(q @ w2q + b2q)
    q = q @ w3q + b3q
    return jax.nn.softmax(q, axis=1)


if __name__ == "__main__":
    key = jax.random.PRNGKey(0)
    k_dyn, k_static, k_params = jax.random.split(key, 3)

    B, N = 2, 8
    dyn = jax.random.normal(k_dyn, (B, N, 3), jnp.float32)
    static = jax.random.normal(k_static, (B, 3), jnp.float32)
    params = init_params(k_params)

    out = agent_forward(dyn, static, params)
    out = jax.block_until_ready(out)
    ref = reference_forward(dyn, static, params)
    assert out.shape == (B, 3)
    assert jnp.allclose(out, ref, atol=2e-3, rtol=2e-3), (out, ref)

    # exercise the multi-tile grid + batch-padding path (still tiny)
    B2 = 20
    dyn2 = jax.random.normal(jax.random.PRNGKey(1), (B2, N, 3), jnp.float32)
    static2 = jax.random.normal(jax.random.PRNGKey(2), (B2, 3), jnp.float32)
    out2 = jax.block_until_ready(agent_forward(dyn2, static2, params, tile_b=8))
    ref2 = reference_forward(dyn2, static2, params)
    assert out2.shape == (B2, 3)
    assert jnp.allclose(out2, ref2, atol=2e-3, rtol=2e-3), (out2, ref2)

    print("KERNEL_OK")
</pallas_src>

<mosaic_0001>
module attributes {stable_mosaic.version = 11 : i64} {
  func.func @_agent_kernel(%arg0: i32, %arg1: memref<8x8x3xf32, #tpu.memory_space<vmem>>, %arg2: memref<8x3xf32, #tpu.memory_space<vmem>>, %arg3: memref<3x120xf32, #tpu.memory_space<vmem>>, %arg4: memref<1x120xf32, #tpu.memory_space<vmem>>, %arg5: memref<120x100xf32, #tpu.memory_space<vmem>>, %arg6: memref<1x100xf32, #tpu.memory_space<vmem>>, %arg7: memref<100x80xf32, #tpu.memory_space<vmem>>, %arg8: memref<1x80xf32, #tpu.memory_space<vmem>>, %arg9: memref<80x60xf32, #tpu.memory_space<vmem>>, %arg10: memref<1x60xf32, #tpu.memory_space<vmem>>, %arg11: memref<60x60xf32, #tpu.memory_space<vmem>>, %arg12: memref<1x60xf32, #tpu.memory_space<vmem>>, %arg13: memref<60x200xf32, #tpu.memory_space<vmem>>, %arg14: memref<1x200xf32, #tpu.memory_space<vmem>>, %arg15: memref<3x200xf32, #tpu.memory_space<vmem>>, %arg16: memref<200x100xf32, #tpu.memory_space<vmem>>, %arg17: memref<1x100xf32, #tpu.memory_space<vmem>>, %arg18: memref<100x128xf32, #tpu.memory_space<vmem>>, %arg19: memref<1x128xf32, #tpu.memory_space<vmem>>, %arg20: memref<8x128xf32, #tpu.memory_space<vmem>>) attributes {dimension_semantics = [#tpu.dimension_semantics<parallel>], iteration_bounds = array<i64: 1>, scalar_prefetch = 0 : i64, scratch_operands = 0 : i64, tpu.core_type = #tpu.core_type<tc>, window_params = [{transform_indices = @transform_0, window_bounds = array<i64: 8, 8, 3>}, {transform_indices = @transform_1, window_bounds = array<i64: 8, 3>}, {pipeline_mode = #tpu.pipeline_mode<synchronous>, transform_indices = @transform_2, window_bounds = array<i64: 3, 120>}, {pipeline_mode = #tpu.pipeline_mode<synchronous>, transform_indices = @transform_3, window_bounds = array<i64: 1, 120>}, {pipeline_mode = #tpu.pipeline_mode<synchronous>, transform_indices = @transform_4, window_bounds = array<i64: 120, 100>}, {pipeline_mode = #tpu.pipeline_mode<synchronous>, transform_indices = @transform_5, window_bounds = array<i64: 1, 100>}, {pipeline_mode = #tpu.pipeline_mode<synchronous>, transform_indices = @transform_6, window_bounds = array<i64: 100, 80>}, {pipeline_mode = #tpu.pipeline_mode<synchronous>, transform_indices = @transform_7, window_bounds = array<i64: 1, 80>}, {pipeline_mode = #tpu.pipeline_mode<synchronous>, transform_indices = @transform_8, window_bounds = array<i64: 80, 60>}, {pipeline_mode = #tpu.pipeline_mode<synchronous>, transform_indices = @transform_9, window_bounds = array<i64: 1, 60>}, {pipeline_mode = #tpu.pipeline_mode<synchronous>, transform_indices = @transform_10, window_bounds = array<i64: 60, 60>}, {pipeline_mode = #tpu.pipeline_mode<synchronous>, transform_indices = @transform_11, window_bounds = array<i64: 1, 60>}, {pipeline_mode = #tpu.pipeline_mode<synchronous>, transform_indices = @transform_12, window_bounds = array<i64: 60, 200>}, {pipeline_mode = #tpu.pipeline_mode<synchronous>, transform_indices = @transform_13, window_bounds = array<i64: 1, 200>}, {pipeline_mode = #tpu.pipeline_mode<synchronous>, transform_indices = @transform_14, window_bounds = array<i64: 3, 200>}, {pipeline_mode = #tpu.pipeline_mode<synchronous>, transform_indices = @transform_15, window_bounds = array<i64: 200, 100>}, {pipeline_mode = #tpu.pipeline_mode<synchronous>, transform_indices = @transform_16, window_bounds = array<i64: 1, 100>}, {pipeline_mode = #tpu.pipeline_mode<synchronous>, transform_indices = @transform_17, window_bounds = array<i64: 100, 128>}, {pipeline_mode = #tpu.pipeline_mode<synchronous>, transform_indices = @transform_18, window_bounds = array<i64: 1, 128>}, {transform_indices = @transform_19, window_bounds = array<i64: 8, 128>}]} {
    %c0 = arith.constant 0 : index
    %c0_0 = arith.constant 0 : index
    %c0_1 = arith.constant 0 : index
    %0 = vector.load %arg1[%c0, %c0_0, %c0_1] : memref<8x8x3xf32, #tpu.memory_space<vmem>>, vector<8x8x3xf32>
    %1 = vector.shape_cast %0 : vector<8x8x3xf32> to vector<64x3xf32>
    %c0_2 = arith.constant 0 : index
    %c0_3 = arith.constant 0 : index
    %2 = vector.load %arg3[%c0_2, %c0_3] : memref<3x120xf32, #tpu.memory_space<vmem>>, vector<3x120xf32>
    %cst = arith.constant dense<0.000000e+00> : vector<64x120xf32>
    %3 = tpu.matmul %1, %2, %cst {dimension_numbers = #tpu.dot_dimension_numbers<[1], [0], [0], [1], [0, 0, 1, 1], [], []>} : vector<64x3xf32>, vector<3x120xf32>, vector<64x120xf32> -> vector<64x120xf32>
    %c0_4 = arith.constant 0 : index
    %c0_5 = arith.constant 0 : index
    %4 = vector.load %arg4[%c0_4, %c0_5] : memref<1x120xf32, #tpu.memory_space<vmem>>, vector<1x120xf32>
    %5 = vector.broadcast %4 : vector<1x120xf32> to vector<64x120xf32>
    %6 = arith.addf %3, %5 : vector<64x120xf32>
    %cst_6 = arith.constant 0.000000e+00 : f32
    %7 = vector.broadcast %cst_6 : f32 to vector<64x120xf32>
    %8 = arith.maximumf %6, %7 : vector<64x120xf32>
    %c0_7 = arith.constant 0 : index
    %c0_8 = arith.constant 0 : index
    %9 = vector.load %arg5[%c0_7, %c0_8] : memref<120x100xf32, #tpu.memory_space<vmem>>, vector<120x100xf32>
    %cst_9 = arith.constant dense<0.000000e+00> : vector<64x100xf32>
    %10 = tpu.matmul %8, %9, %cst_9 {dimension_numbers = #tpu.dot_dimension_numbers<[1], [0], [0], [1], [0, 0, 1, 1], [], []>} : vector<64x120xf32>, vector<120x100xf32>, vector<64x100xf32> -> vector<64x100xf32>
    %c0_10 = arith.constant 0 : index
    %c0_11 = arith.constant 0 : index
    %11 = vector.load %arg6[%c0_10, %c0_11] : memref<1x100xf32, #tpu.memory_space<vmem>>, vector<1x100xf32>
    %12 = vector.broadcast %11 : vector<1x100xf32> to vector<64x100xf32>
    %13 = arith.addf %10, %12 : vector<64x100xf32>
    %cst_12 = arith.constant 0.000000e+00 : f32
    %14 = vector.broadcast %cst_12 : f32 to vector<64x100xf32>
    %15 = arith.maximumf %13, %14 : vector<64x100xf32>
    %c0_13 = arith.constant 0 : index
    %c0_14 = arith.constant 0 : index
    %16 = vector.load %arg7[%c0_13, %c0_14] : memref<100x80xf32, #tpu.memory_space<vmem>>, vector<100x80xf32>
    %cst_15 = arith.constant dense<0.000000e+00> : vector<64x80xf32>
    %17 = tpu.matmul %15, %16, %cst_15 {dimension_numbers = #tpu.dot_dimension_numbers<[1], [0], [0], [1], [0, 0, 1, 1], [], []>} : vector<64x100xf32>, vector<100x80xf32>, vector<64x80xf32> -> vector<64x80xf32>
    %c0_16 = arith.constant 0 : index
    %c0_17 = arith.constant 0 : index
    %18 = vector.load %arg8[%c0_16, %c0_17] : memref<1x80xf32, #tpu.memory_space<vmem>>, vector<1x80xf32>
    %19 = vector.broadcast %18 : vector<1x80xf32> to vector<64x80xf32>
    %20 = arith.addf %17, %19 : vector<64x80xf32>
    %cst_18 = arith.constant 0.000000e+00 : f32
    %21 = vector.broadcast %cst_18 : f32 to vector<64x80xf32>
    %22 = arith.maximumf %20, %21 : vector<64x80xf32>
    %23 = vector.shape_cast %22 : vector<64x80xf32> to vector<8x8x80xf32>
    %cst_19 = arith.constant dense<0.000000e+00> : vector<8x80xf32>
    %24 = vector.multi_reduction <add>, %23, %cst_19 [0] : vector<8x8x80xf32> to vector<8x80xf32>
    %c0_20 = arith.constant 0 : index
    %c0_21 = arith.constant 0 : index
    %25 = vector.load %arg9[%c0_20, %c0_21] : memref<80x60xf32, #tpu.memory_space<vmem>>, vector<80x60xf32>
    %cst_22 = arith.constant dense<0.000000e+00> : vector<8x60xf32>
    %26 = tpu.matmul %24, %25, %cst_22 {dimension_numbers = #tpu.dot_dimension_numbers<[1], [0], [0], [1], [0, 0, 1, 1], [], []>} : vector<8x80xf32>, vector<80x60xf32>, vector<8x60xf32> -> vector<8x60xf32>
    %c0_23 = arith.constant 0 : index
    %c0_24 = arith.constant 0 : index
    %27 = vector.load %arg10[%c0_23, %c0_24] : memref<1x60xf32, #tpu.memory_space<vmem>>, vector<1x60xf32>
    %28 = vector.broadcast %27 : vector<1x60xf32> to vector<8x60xf32>
    %29 = arith.addf %26, %28 : vector<8x60xf32>
    %cst_25 = arith.constant 0.000000e+00 : f32
    %30 = vector.broadcast %cst_25 : f32 to vector<8x60xf32>
    %31 = arith.maximumf %29, %30 : vector<8x60xf32>
    %c0_26 = arith.constant 0 : index
    %c0_27 = arith.constant 0 : index
    %32 = vector.load %arg11[%c0_26, %c0_27] : memref<60x60xf32, #tpu.memory_space<vmem>>, vector<60x60xf32>
    %cst_28 = arith.constant dense<0.000000e+00> : vector<8x60xf32>
    %33 = tpu.matmul %31, %32, %cst_28 {dimension_numbers = #tpu.dot_dimension_numbers<[1], [0], [0], [1], [0, 0, 1, 1], [], []>} : vector<8x60xf32>, vector<60x60xf32>, vector<8x60xf32> -> vector<8x60xf32>
    %c0_29 = arith.constant 0 : index
    %c0_30 = arith.constant 0 : index
    %34 = vector.load %arg12[%c0_29, %c0_30] : memref<1x60xf32, #tpu.memory_space<vmem>>, vector<1x60xf32>
    %35 = vector.broadcast %34 : vector<1x60xf32> to vector<8x60xf32>
    %36 = arith.addf %33, %35 : vector<8x60xf32>
    %cst_31 = arith.constant 0.000000e+00 : f32
    %37 = vector.broadcast %cst_31 : f32 to vector<8x60xf32>
    %38 = arith.maximumf %36, %37 : vector<8x60xf32>
    %c0_32 = arith.constant 0 : index
    %c0_33 = arith.constant 0 : index
    %39 = vector.load %arg13[%c0_32, %c0_33] : memref<60x200xf32, #tpu.memory_space<vmem>>, vector<60x200xf32>
    %cst_34 = arith.constant dense<0.000000e+00> : vector<8x200xf32>
    %40 = tpu.matmul %38, %39, %cst_34 {dimension_numbers = #tpu.dot_dimension_numbers<[1], [0], [0], [1], [0, 0, 1, 1], [], []>} : vector<8x60xf32>, vector<60x200xf32>, vector<8x200xf32> -> vector<8x200xf32>
    %c0_35 = arith.constant 0 : index
    %c0_36 = arith.constant 0 : index
    %41 = vector.load %arg2[%c0_35, %c0_36] : memref<8x3xf32, #tpu.memory_space<vmem>>, vector<8x3xf32>
    %c0_37 = arith.constant 0 : index
    %c0_38 = arith.constant 0 : index
    %42 = vector.load %arg15[%c0_37, %c0_38] : memref<3x200xf32, #tpu.memory_space<vmem>>, vector<3x200xf32>
    %cst_39 = arith.constant dense<0.000000e+00> : vector<8x200xf32>
    %43 = tpu.matmul %41, %42, %cst_39 {dimension_numbers = #tpu.dot_dimension_numbers<[1], [0], [0], [1], [0, 0, 1, 1], [], []>} : vector<8x3xf32>, vector<3x200xf32>, vector<8x200xf32> -> vector<8x200xf32>
    %44 = arith.addf %40, %43 : vector<8x200xf32>
    %c0_40 = arith.constant 0 : index
    %c0_41 = arith.constant 0 : index
    %45 = vector.load %arg14[%c0_40, %c0_41] : memref<1x200xf32, #tpu.memory_space<vmem>>, vector<1x200xf32>
    %46 = vector.broadcast %45 : vector<1x200xf32> to vector<8x200xf32>
    %47 = arith.addf %44, %46 : vector<8x200xf32>
    %cst_42 = arith.constant 0.000000e+00 : f32
    %48 = vector.broadcast %cst_42 : f32 to vector<8x200xf32>
    %49 = arith.maximumf %47, %48 : vector<8x200xf32>
    %c0_43 = arith.constant 0 : index
    %c0_44 = arith.constant 0 : index
    %50 = vector.load %arg16[%c0_43, %c0_44] : memref<200x100xf32, #tpu.memory_space<vmem>>, vector<200x100xf32>
    %cst_45 = arith.constant dense<0.000000e+00> : vector<8x100xf32>
    %51 = tpu.matmul %49, %50, %cst_45 {dimension_numbers = #tpu.dot_dimension_numbers<[1], [0], [0], [1], [0, 0, 1, 1], [], []>} : vector<8x200xf32>, vector<200x100xf32>, vector<8x100xf32> -> vector<8x100xf32>
    %c0_46 = arith.constant 0 : index
    %c0_47 = arith.constant 0 : index
    %52 = vector.load %arg17[%c0_46, %c0_47] : memref<1x100xf32, #tpu.memory_space<vmem>>, vector<1x100xf32>
    %53 = vector.broadcast %52 : vector<1x100xf32> to vector<8x100xf32>
    %54 = arith.addf %51, %53 : vector<8x100xf32>
    %cst_48 = arith.constant 0.000000e+00 : f32
    %55 = vector.broadcast %cst_48 : f32 to vector<8x100xf32>
    %56 = arith.maximumf %54, %55 : vector<8x100xf32>
    %c0_49 = arith.constant 0 : index
    %c0_50 = arith.constant 0 : index
    %57 = vector.load %arg18[%c0_49, %c0_50] : memref<100x128xf32, #tpu.memory_space<vmem>>, vector<100x128xf32>
    %cst_51 = arith.constant dense<0.000000e+00> : vector<8x128xf32>
    %58 = tpu.matmul %56, %57, %cst_51 {dimension_numbers = #tpu.dot_dimension_numbers<[1], [0], [0], [1], [0, 0, 1, 1], [], []>} : vector<8x100xf32>, vector<100x128xf32>, vector<8x128xf32> -> vector<8x128xf32>
    %c0_52 = arith.constant 0 : index
    %c0_53 = arith.constant 0 : index
    %59 = vector.load %arg19[%c0_52, %c0_53] : memref<1x128xf32, #tpu.memory_space<vmem>>, vector<1x128xf32>
    %60 = vector.broadcast %59 : vector<1x128xf32> to vector<8x128xf32>
    %61 = arith.addf %58, %60 : vector<8x128xf32>
    %cst_54 = arith.constant dense<0xFF800000> : vector<8xf32>
    %62 = vector.multi_reduction <maximumf>, %61, %cst_54 [1] : vector<8x128xf32> to vector<8xf32>
    %63 = vector.shape_cast %62 : vector<8xf32> to vector<8x1xf32>
    %64 = vector.broadcast %63 : vector<8x1xf32> to vector<8x128xf32>
    %65 = arith.subf %61, %64 : vector<8x128xf32>
    %66 = math.exp %65 : vector<8x128xf32>
    %cst_55 = arith.constant dense<0.000000e+00> : vector<8xf32>
    %67 = vector.multi_reduction <add>, %66, %cst_55 [1] : vector<8x128xf32> to vector<8xf32>
    %68 = vector.shape_cast %67 : vector<8xf32> to vector<8x1xf32>
    %69 = tpu.reciprocal %68 {approx = true} : vector<8x1xf32> -> vector<8x1xf32>
    %70 = vector.broadcast %69 : vector<8x1xf32> to vector<8x128xf32>
    %71 = arith.mulf %66, %70 : vector<8x128xf32>
    %c0_56 = arith.constant 0 : index
    %c0_57 = arith.constant 0 : index
    %72 = vector.load %arg20[%c0_56, %c0_57] : memref<8x128xf32, #tpu.memory_space<vmem>>, vector<8x128xf32>
    tpu.vector_store %arg20[%c0_56, %c0_57], %71 {strides = array<i32>} : memref<8x128xf32, #tpu.memory_space<vmem>>, vector<8x128xf32>,
    return
  }
  func.func @transform_0(%arg0: i32) -> (i32, i32, i32) {
    %c0_i32 = arith.constant 0 : i32
    %c0_i32_0 = arith.constant 0 : i32
    %c0_i32_1 = arith.constant 0 : i32
    return %c0_i32, %arg0, %c0_i32_0 : i32, i32, i32
  }
  func.func @transform_1(%arg0: i32) -> (i32, i32) {
    %c0_i32 = arith.constant 0 : i32
    %c0_i32_0 = arith.constant 0 : i32
    return %arg0, %c0_i32 : i32, i32
  }
  func.func @transform_2(%arg0: i32) -> (i32, i32) {
    %c0_i32 = arith.constant 0 : i32
    %c0_i32_0 = arith.constant 0 : i32
    %c0_i32_1 = arith.constant 0 : i32
    return %c0_i32, %c0_i32_0 : i32, i32
  }
  func.func @transform_3(%arg0: i32) -> (i32, i32) {
    %c0_i32 = arith.constant 0 : i32
    %c0_i32_0 = arith.constant 0 : i32
    %c0_i32_1 = arith.constant 0 : i32
    return %c0_i32, %c0_i32_0 : i32, i32
  }
  func.func @transform_4(%arg0: i32) -> (i32, i32) {
    %c0_i32 = arith.constant 0 : i32
    %c0_i32_0 = arith.constant 0 : i32
    %c0_i32_1 = arith.constant 0 : i32
    return %c0_i32, %c0_i32_0 : i32, i32
  }
  func.func @transform_5(%arg0: i32) -> (i32, i32) {
    %c0_i32 = arith.constant 0 : i32
    %c0_i32_0 = arith.constant 0 : i32
    %c0_i32_1 = arith.constant 0 : i32
    return %c0_i32, %c0_i32_0 : i32, i32
  }
  func.func @transform_6(%arg0: i32) -> (i32, i32) {
    %c0_i32 = arith.constant 0 : i32
    %c0_i32_0 = arith.constant 0 : i32
    %c0_i32_1 = arith.constant 0 : i32
    return %c0_i32, %c0_i32_0 : i32, i32
  }
  func.func @transform_7(%arg0: i32) -> (i32, i32) {
    %c0_i32 = arith.constant 0 : i32
    %c0_i32_0 = arith.constant 0 : i32
    %c0_i32_1 = arith.constant 0 : i32
    return %c0_i32, %c0_i32_0 : i32, i32
  }
  func.func @transform_8(%arg0: i32) -> (i32, i32) {
    %c0_i32 = arith.constant 0 : i32
    %c0_i32_0 = arith.constant 0 : i32
    %c0_i32_1 = arith.constant 0 : i32
    return %c0_i32, %c0_i32_0 : i32, i32
  }
  func.func @transform_9(%arg0: i32) -> (i32, i32) {
    %c0_i32 = arith.constant 0 : i32
    %c0_i32_0 = arith.constant 0 : i32
    %c0_i32_1 = arith.constant 0 : i32
    return %c0_i32, %c0_i32_0 : i32, i32
  }
  func.func @transform_10(%arg0: i32) -> (i32, i32) {
    %c0_i32 = arith.constant 0 : i32
    %c0_i32_0 = arith.constant 0 : i32
    %c0_i32_1 = arith.constant 0 : i32
    return %c0_i32, %c0_i32_0 : i32, i32
  }
  func.func @transform_11(%arg0: i32) -> (i32, i32) {
    %c0_i32 = arith.constant 0 : i32
    %c0_i32_0 = arith.constant 0 : i32
    %c0_i32_1 = arith.constant 0 : i32
    return %c0_i32, %c0_i32_0 : i32, i32
  }
  func.func @transform_12(%arg0: i32) -> (i32, i32) {
    %c0_i32 = arith.constant 0 : i32
    %c0_i32_0 = arith.constant 0 : i32
    %c0_i32_1 = arith.constant 0 : i32
    return %c0_i32, %c0_i32_0 : i32, i32
  }
  func.func @transform_13(%arg0: i32) -> (i32, i32) {
    %c0_i32 = arith.constant 0 : i32
    %c0_i32_0 = arith.constant 0 : i32
    %c0_i32_1 = arith.constant 0 : i32
    return %c0_i32, %c0_i32_0 : i32, i32
  }
  func.func @transform_14(%arg0: i32) -> (i32, i32) {
    %c0_i32 = arith.constant 0 : i32
    %c0_i32_0 = arith.constant 0 : i32
    %c0_i32_1 = arith.constant 0 : i32
    return %c0_i32, %c0_i32_0 : i32, i32
  }
  func.func @transform_15(%arg0: i32) -> (i32, i32) {
    %c0_i32 = arith.constant 0 : i32
    %c0_i32_0 = arith.constant 0 : i32
    %c0_i32_1 = arith.constant 0 : i32
    return %c0_i32, %c0_i32_0 : i32, i32
  }
  func.func @transform_16(%arg0: i32) -> (i32, i32) {
    %c0_i32 = arith.constant 0 : i32
    %c0_i32_0 = arith.constant 0 : i32
    %c0_i32_1 = arith.constant 0 : i32
    return %c0_i32, %c0_i32_0 : i32, i32
  }
  func.func @transform_17(%arg0: i32) -> (i32, i32) {
    %c0_i32 = arith.constant 0 : i32
    %c0_i32_0 = arith.constant 0 : i32
    %c0_i32_1 = arith.constant 0 : i32
    return %c0_i32, %c0_i32_0 : i32, i32
  }
  func.func @transform_18(%arg0: i32) -> (i32, i32) {
    %c0_i32 = arith.constant 0 : i32
    %c0_i32_0 = arith.constant 0 : i32
    %c0_i32_1 = arith.constant 0 : i32
    return %c0_i32, %c0_i32_0 : i32, i32
  }
  func.func @transform_19(%arg0: i32) -> (i32, i32) {
    %c0_i32 = arith.constant 0 : i32
    %c0_i32_0 = arith.constant 0 : i32
    return %arg0, %c0_i32 : i32, i32
  }
}

</mosaic_0001>

<bundles_post_ra>
// kernel: tpu_custom_call.1
= control target key start
LH: loop header
LB: loop body
LE: loop exit
PB: predicated region body
PF: predicated region fallthrough
CT: control target
= control target key end

     0   :  { %s2447_s0 = inlined_call_operand.vmem [shape: f32[8,8,3], index: 0, kind: input, shape index: {}]   ;;  %s2448_s1 = inlined_call_operand.vmem [shape: f32[8,3], index: 1, kind: input, shape index: {}]   ;;  %s2449_s2 = inlined_call_operand.hbm [shape: f32[3,120], index: 2, kind: input, shape index: {}]   ;;  %s2450_s3 = inlined_call_operand.vmem [shape: f32[1,120], index: 3, kind: input, shape index: {}]   ;;  %s2451_s4 = inlined_call_operand.vmem [shape: f32[120,100], index: 4, kind: input, shape index: {}]   ;;  %s2452_s5 = inlined_call_operand.hbm [shape: f32[1,100], index: 5, kind: input, shape index: {}]   ;;  %s2453_s6 = inlined_call_operand.vmem [shape: f32[100,80], index: 6, kind: input, shape index: {}]   ;;  %s2454_s7 = inlined_call_operand.hbm [shape: f32[1,80], index: 7, kind: input, shape index: {}]   ;;  %s2455_s8 = inlined_call_operand.vmem [shape: f32[80,60], index: 8, kind: input, shape index: {}]   ;;  %s2456_s9 = inlined_call_operand.hbm [shape: f32[1,60], index: 9, kind: input, shape index: {}]   ;;  %s2457_s10 = inlined_call_operand.vmem [shape: f32[60,60], index: 10, kind: input, shape index: {}]   ;;  %s2458_s11 = inlined_call_operand.hbm [shape: f32[1,60], index: 11, kind: input, shape index: {}]   ;;  %s2459_s12 = inlined_call_operand.vmem [shape: f32[60,200], index: 12, kind: input, shape index: {}]   ;;  %s2460_s13 = inlined_call_operand.vmem [shape: f32[1,200], index: 13, kind: input, shape index: {}]   ;;  %s2461_s14 = inlined_call_operand.vmem [shape: f32[3,200], index: 14, kind: input, shape index: {}]   ;;  %s2462_s15 = inlined_call_operand.vmem [shape: f32[200,100], index: 15, kind: input, shape index: {}]   ;;  %s2463_s16 = inlined_call_operand.vmem [shape: f32[1,100], index: 16, kind: input, shape index: {}]   ;;  %s2464_s17 = inlined_call_operand.vmem [shape: f32[100,128], index: 17, kind: input, shape index: {}]   ;;  %s2465_s18 = inlined_call_operand.vmem [shape: f32[1,128], index: 18, kind: input, shape index: {}]   ;;  %s2466_s19 = inlined_call_operand.hbm [shape: f32[8,128], index: 19, kind: output, shape index: {}]  }
   0x1   :  { %2469 = sst [smem:[#allocation16_spill]] %s2447_s0 }
   0x2   :  { %2470 = sst [smem:[#allocation17_spill]] %s2448_s1 }
   0x3   :  { %2471 = sst [smem:[#allocation18_spill]] %s2449_s2 }
   0x4   :  { %2472 = sst [smem:[#allocation19_spill]] %s2450_s3 }
   0x5   :  { %24 = vsyncpa [#allocation3], 0 }
   0x6   :  { %25 = vsyncpa [#allocation6], 0 }
   0x7   :  { %26 = vsyncpa [#allocation9], 0 }
   0x8   :  { %27 = vsyncpa [#allocation4], 0  ;;  %s1831_s0 = smov [#allocation5]   ;;  %s1832_s20 = smov [#allocation8]  }
   0x9   :  { %s52_s30 = sshll.u32 %s1831_s0, 4  ;;  %s76_s21 = sshll.u32 %s1832_s20, 4  ;;  %s53_s30 = int_to_ptr.vmem [resolvable:$true] %s52_s30  ;;  %s77_s21 = int_to_ptr.vmem [resolvable:$true] %s76_s21 }
   0xa   :  { %s1691_s2 = scalar_lea.hbm %s2452_s5, 16 }
   0xb   :  { %p1692_p0 = scmp.ne.s32.totalorder %s2452_s5, %s1691_s2  ;;  %p1695_p1 = scmp.lt.u32.totalorder %s1691_s2, %s2452_s5 }
   0xd   :  { %p1697_p2 = pnand %p1695_p1, %p1692_p0 }
   0xf   :  { %1700 = shalt.err (!%p1697_p2)
}
  0x10   :  { %s1701_s26 = scalar_lea.vmem %s53_s30, 16  ;;  %s1705_s27 = scalar_lea.vmem %s53_s30, 32 }
  0x11   :  { %p1702_p3 = scmp.ne.s32.totalorder %s53_s30, %s1701_s26  ;;  %p1706_p4 = scmp.lt.s32.totalorder %s53_s30, %s53_s30 }
  0x12   :  { %p1707_p5 = scmp.lt.s32.totalorder %s1705_s27, %s1701_s26 }
  0x14   :  { %p1708_p6 = por %p1707_p5, %p1706_p4 }
  0x16   :  { %p1709_p7 = pnand %p1708_p6, %p1702_p3 }
  0x18   :  { %1712 = shalt.err (!%p1709_p7)
}
  0x19   :  { %55 = dma.hbm_to_vmem [thread:$0]  %s2452_s5, 16, %s53_s30, [#allocation6]  }
  0x1a   :  { %s1713_s1 = scalar_lea.hbm %s2456_s9, 16 }
  0x1b   :  { %p1714_p8 = scmp.ne.s32.totalorder %s2456_s9, %s1713_s1  ;;  %p1717_p9 = scmp.lt.u32.totalorder %s1713_s1, %s2456_s9 }
  0x1d   :  { %p1719_p10 = pnand %p1717_p9, %p1714_p8 }
  0x1f   :  { %1722 = shalt.err (!%p1719_p10)
}
  0x20   :  { %s1723_s25 = scalar_lea.vmem %s77_s21, 16  ;;  %s1727_s3 = scalar_lea.vmem %s77_s21, 32 }
  0x21   :  { %p1724_p11 = scmp.ne.s32.totalorder %s77_s21, %s1723_s25  ;;  %p1728_p12 = scmp.lt.s32.totalorder %s77_s21, %s77_s21 }
  0x22   :  { %p1729_p13 = scmp.lt.s32.totalorder %s1727_s3, %s1723_s25 }
  0x24   :  { %p1730_p0 = por %p1729_p13, %p1728_p12 }
  0x26   :  { %p1731_p1 = pnand %p1730_p0, %p1724_p11 }
  0x28   :  { %1734 = shalt.err (!%p1731_p1)
}
  0x29   :  { %79 = dma.hbm_to_vmem [thread:$0]  %s2456_s9, 16, %s77_s21, [#allocation9]  }
  0x2a   :  { %s1833_s26 = smov [#allocation2]   ;;  %s1834_s28 = smov [#allocation7]  }
  0x2b   :  { %s38_s27 = sshll.u32 %s1833_s26, 4  ;;  %s64_s29 = sshll.u32 %s1834_s28, 4  ;;  %s39_s27 = int_to_ptr.vmem [resolvable:$true] %s38_s27  ;;  %s65_s29 = int_to_ptr.vmem [resolvable:$true] %s64_s29 }
  0x2c   :  { %s2473_s1 = sld [smem:[#allocation18_spill]] }
  0x32   :  { %s1735_s22 = scalar_lea.hbm %s2473_s1, 64 }
  0x33   :  { %p1736_p2 = scmp.ne.s32.totalorder %s2473_s1, %s1735_s22  ;;  %p1739_p3 = scmp.lt.u32.totalorder %s1735_s22, %s2473_s1 }
  0x35   :  { %p1741_p4 = pnand %p1739_p3, %p1736_p2 }
  0x37   :  { %1744 = shalt.err (!%p1741_p4)
}
  0x38   :  { %s1745_s9 = scalar_lea.vmem %s39_s27, 64  ;;  %p1750_p6 = scmp.lt.s32.totalorder %s39_s27, %s39_s27 }
  0x39   :  { %p1746_p5 = scmp.ne.s32.totalorder %s39_s27, %s1745_s9  ;;  %p1751_p7 = scmp.lt.s32.totalorder %s1745_s9, %s1745_s9 }
  0x3b   :  { %p1752_p8 = por %p1751_p7, %p1750_p6 }
  0x3d   :  { %p1753_p9 = pnand %p1752_p8, %p1746_p5 }
  0x3f   :  { %1756 = shalt.err (!%p1753_p9)
}
  0x40   :  { %41 = dma.hbm_to_vmem [thread:$0]  %s2473_s1, 64, %s39_s27, [#allocation3]  }
  0x41   :  { %s1757_s26 = scalar_lea.hbm %s2454_s7, 16 }
  0x42   :  { %p1758_p10 = scmp.ne.s32.totalorder %s2454_s7, %s1757_s26  ;;  %p1761_p11 = scmp.lt.u32.totalorder %s1757_s26, %s2454_s7 }
  0x44   :  { %p1763_p12 = pnand %p1761_p11, %p1758_p10 }
  0x46   :  { %1766 = shalt.err (!%p1763_p12)
}
  0x47   :  { %s1767_s2 = scalar_lea.vmem %s65_s29, 16  ;;  %s1771_s23 = scalar_lea.vmem %s65_s29, 32 }
  0x48   :  { %p1768_p13 = scmp.ne.s32.totalorder %s65_s29, %s1767_s2  ;;  %p1772_p0 = scmp.lt.s32.totalorder %s65_s29, %s65_s29 }
  0x49   :  { %p1773_p1 = scmp.lt.s32.totalorder %s1771_s23, %s1767_s2 }
  0x4b   :  { %p1774_p2 = por %p1773_p1, %p1772_p0 }
  0x4d   :  { %p1775_p3 = pnand %p1774_p2, %p1768_p13 }
  0x4f   :  { %1778 = shalt.err (!%p1775_p3)
}
  0x50   :  { %67 = dma.hbm_to_vmem [thread:$0]  %s2454_s7, 16, %s65_s29, [#allocation6]  }
  0x51   :  { %s1835_s24 = smov [#allocation10]   ;;  %s1779_s3 = scalar_lea.hbm %s2458_s11, 16 }
  0x52   :  { %s88_s25 = sshll.u32 %s1835_s24, 4  ;;  %p1780_p4 = scmp.ne.s32.totalorder %s2458_s11, %s1779_s3  ;;  %s89_s25 = int_to_ptr.vmem [resolvable:$true] %s88_s25 }
  0x53   :  { %p1783_p5 = scmp.lt.u32.totalorder %s1779_s3, %s2458_s11 }
  0x55   :  { %p1785_p6 = pnand %p1783_p5, %p1780_p4 }
  0x57   :  { %1788 = shalt.err (!%p1785_p6)
}
  0x58   :  { %s1789_s0 = scalar_lea.vmem %s89_s25, 16  ;;  %s1793_s7 = scalar_lea.vmem %s89_s25, 32 }
  0x59   :  { %p1790_p7 = scmp.ne.s32.totalorder %s89_s25, %s1789_s0  ;;  %p1794_p8 = scmp.lt.s32.totalorder %s89_s25, %s89_s25 }
  0x5a   :  { %p1795_p9 = scmp.lt.s32.totalorder %s1793_s7, %s1789_s0 }
  0x5c   :  { %p1796_p10 = por %p1795_p9, %p1794_p8 }
  0x5e   :  { %p1797_p11 = pnand %p1796_p10, %p1790_p7 }
  0x60   :  { %1800 = shalt.err (!%p1797_p11)
}
  0x61   :  { %91 = dma.hbm_to_vmem [thread:$0]  %s2458_s11, 16, %s89_s25, [#allocation9]  }
  0x62   :  { %1823 = dma.done.wait [#allocation3], 64  }
  0x63   :  { %1824 = vsyncadd [#allocation3], 4294967232 }
  0x64   :  { %1825 = dma.done.wait [#allocation6], 32  }
  0x65   :  { %1826 = vsyncadd [#allocation6], 4294967264 }
  0x66   :  { %1827 = dma.done.wait [#allocation9], 32  }
  0x67   :  { %1828 = vsyncadd [#allocation9], 4294967264  ;;  %vm162_vm0 = vcmask 1042432   ;;  %vm137_vm1 = vcmask 23552   ;;  %v129_v0 = vld [vmem:[#allocation2] sm:$0x7] }
  0x68   :  { %s2474_s23 = sld [smem:[#allocation16_spill]]  ;;  %1357 = vmatprep.subr.msk.mxu1 %vm162_vm0, %v129_v0  ;;  %v279_v4 = vld [vmem:[%s2451_s4] sm:$0xff]  ;;  %v280_v5 = vld [vmem:[%s2451_s4 + $0x8] sm:$0xff]  ;;  %v281_v6 = vld [vmem:[%s2451_s4 + $0x10] sm:$0xff]  ;;  %s2475_s30 = sld [smem:[#allocation19_spill]]  ;;  %vm301_vm2 = vcmask 982016  }
  0x69   :  { %1358 = vmatpush3.msk.msra.mxu1 %vm162_vm0, %v129_v0  ;;  %v1522_v8 = vpack.c.bf16 %v280_v5, %v279_v4  ;;  %v282_v9 = vld [vmem:[%s2451_s4 + $0x18] sm:$0xff]  ;;  %v283_v12 = vld [vmem:[%s2451_s4 + $0x20] sm:$0xff]  ;;  %v284_v13 = vld [vmem:[%s2451_s4 + $0x28] sm:$0xff]  ;;  %vm484_vm3 = vcmask 1043456   ;;  %vm459_vm4 = vcmask 818176   ;;  %vm1837_vm5 = vmmov 0  }
  0x6a   :  { %v1526_v11 = vpack.c.bf16 %v282_v9, %v281_v6  ;;  %v1530_v16 = vpack.c.bf16 %v284_v13, %v283_v12  ;;  %v285_v17 = vld [vmem:[%s2451_s4 + $0x30] sm:$0xff]  ;;  %v286_v18 = vld [vmem:[%s2451_s4 + $0x38] sm:$0xff]  ;;  %v287_v21 = vld [vmem:[%s2451_s4 + $0x40] sm:$0xff]  ;;  %vm601_vm6 = vcmask 654336   ;;  %vm1839_vm7 = vmmov 1   ;;  %s2478_s1 = sld [smem:[#allocation17_spill]] }
  0x6b   :  { %1523 = vmatprep.subr.bf16.mxu1 %v1522_v8  ;;  %v1534_v20 = vpack.c.bf16 %v286_v18, %v285_v17  ;;  %v288_v22 = vld [vmem:[%s2451_s4 + $0x48] sm:$0xff]  ;;  %v289_v24 = vld [vmem:[%s2451_s4 + $0x50] sm:$0xff]  ;;  %v290_v25 = vld [vmem:[%s2451_s4 + $0x58] sm:$0xff]  ;;  %vm723_vm9 = vcmask 490496   ;;  %vm1027_vm10 = vcmask 588800  }
  0x6c   :  { %v1538_v23 = vpack.c.bf16 %v288_v22, %v287_v21  ;;  %v1542_v26 = vpack.c.bf16 %v290_v25, %v289_v24  ;;  %v291_v27 = vld [vmem:[%s2451_s4 + $0x60] sm:$0xff]  ;;  %v292_v28 = vld [vmem:[%s2451_s4 + $0x68] sm:$0xff]  ;;  %v293_v30 = vld [vmem:[%s2451_s4 + $0x70] sm:$0xff] }
  0x6d   :  { %v1546_v29 = vpack.c.bf16 %v292_v28, %v291_v27  ;;  %v439_v31 = vld [vmem:[%s2453_s6] sm:$0xff]  ;;  %v440_v32 = vld [vmem:[%s2453_s6 + $0x8] sm:$0xff]  ;;  %v441_v33 = vld [vmem:[%s2453_s6 + $0x10] sm:$0xff] }
  0x6e   :  { %v121_v1 = vld [vmem:[%s2474_s23] sm:$0xff]  ;;  %v122_v2 = vld [vmem:[%s2474_s23 + $0x8] sm:$0xff]  ;;  %v123_v3 = vld [vmem:[%s2474_s23 + $0x10] sm:$0xff]  ;;  %v1550_v34 = vpack.c.bf16 %v440_v32, %v439_v31 }
  0x6f   :  { %1359 = vmatprep.mubr.msk.f32.mxu1 %vm137_vm1, %v121_v1  ;;  %v124_v7 = vld [vmem:[%s2474_s23 + $0x18] sm:$0xff]  ;;  %v125_v10 = vld [vmem:[%s2474_s23 + $0x20] sm:$0xff]  ;;  %v126_v14 = vld [vmem:[%s2474_s23 + $0x28] sm:$0xff] }
  0x70   :  { %1360 = vmatmul.mubr.msk.f32.vlgmr.msra.gmra.mrb[0].mxu1 %vm137_vm1, %v122_v2  ;;  %v127_v15 = vld [vmem:[%s2474_s23 + $0x30] sm:$0xff]  ;;  %v128_v19 = vld [vmem:[%s2474_s23 + $0x38] sm:$0xff]  ;;  %v443_v37 = vld [vmem:[%s2453_s6 + $0x20] sm:$0xff]  ;;  %1551 = vmatprep.subr.bf16.mxu0 %v1550_v34 }
  0x71   :  { %1362 = vmatprep.mubr.msk.f32.mxu1 %vm137_vm1, %v123_v3  ;;  %1525 = vmatpush3.bf16.msra.mxu1 %v1522_v8  ;;  %v442_v35 = vld [vmem:[%s2453_s6 + $0x18] sm:$0xff]  ;;  %v444_v38 = vld [vmem:[%s2453_s6 + $0x28] sm:$0xff]  ;;  %v445_v40 = vld [vmem:[%s2453_s6 + $0x30] sm:$0xff] }
  0x72   :  { %1527 = vmatprep.subr.bf16.mxu1 %v1526_v11  ;;  %v1554_v36 = vpack.c.bf16 %v442_v35, %v441_v33  ;;  %1553 = vmatpush3.bf16.msra.mxu0 %v1550_v34  ;;  %v1558_v39 = vpack.c.bf16 %v444_v38, %v443_v37  ;;  %v446_v41 = vld [vmem:[%s2453_s6 + $0x38] sm:$0xff]  ;;  %v447_v43 = vld [vmem:[%s2453_s6 + $0x40] sm:$0xff]  ;;  %v448_v44 = vld [vmem:[%s2453_s6 + $0x48] sm:$0xff] }
  0x73   :  { %v1562_v42 = vpack.c.bf16 %v446_v41, %v445_v40  ;;  %v1566_v45 = vpack.c.bf16 %v448_v44, %v447_v43  ;;  %v1225_v46 = vld [vmem:[%s2475_s30] ss:$0 sm:$0xff]  ;;  %v450_v8 = vld [vmem:[%s2453_s6 + $0x58] sm:$0xff]  ;;  %v618_v37 = vld [vmem:[%s2455_s8 + $0x8] sm:$0xff] }
  0x74   :  { %1363 = vmatmul.mubr.msk.f32.gmra.mrb[2].mxu1 %vm137_vm1, %v124_v7  ;;  %1555 = vmatprep.subr.bf16.mxu0 %v1554_v36  ;;  %v449_v7 = vld [vmem:[%s2453_s6 + $0x50] sm:$0xff]  ;;  %v620_v41 = vld [vmem:[%s2455_s8 + $0x18] sm:$0xff]  ;;  %v621_v43 = vld [vmem:[%s2455_s8 + $0x20] sm:$0xff] }
  0x75   :  { %1365 = vmatprep.mubr.msk.f32.mxu1 %vm137_vm1, %v125_v10  ;;  %1529 = vmatpush3.bf16.msra.mxu1 %v1526_v11  ;;  %v1570_v9 = vpack.c.bf16 %v450_v8, %v449_v7  ;;  %v451_v10 = vld [vmem:[%s2453_s6 + $0x60] sm:$0xf]  ;;  %v1235_v11 = vld [vmem:[#allocation5] ss:$0 sm:$0xff]  ;;  %v619_v40 = vld [vmem:[%s2455_s8 + $0x10] sm:$0xff] }
  0x76   :  { %1531 = vmatprep.subr.bf16.mxu1 %v1530_v16  ;;  %1557 = vmatpush3.bf16.msra.mxu0 %v1554_v36  ;;  %v617_v36 = vld [vmem:[%s2455_s8] sm:$0xff]  ;;  %v622_v44 = vld [vmem:[%s2455_s8 + $0x28] sm:$0xff]  ;;  %vm2218_vm8 = vmpackc.low %vm484_vm3, %vm1839_vm7 }
  0x77   :  { %1559 = vmatprep.subr.bf16.mxu0 %v1558_v39  ;;  %v1575_v38 = vpack.c.bf16 %v618_v37, %v617_v36 }
  0x78   :  { %1366 = vmatmul.mubr.msk.f32.gmra.mrb[4].mxu1 %vm137_vm1, %v126_v14 }
  0x79   :  { %1368 = vmatprep.mubr.msk.f32.mxu1 %vm137_vm1, %v127_v15  ;;  %1533 = vmatpush3.bf16.msra.mxu1 %v1530_v16 }
  0x7a   :  { %1535 = vmatprep.subr.bf16.mxu1 %v1534_v20  ;;  %1561 = vmatpush3.bf16.msra.mxu0 %v1558_v39  ;;  %v1836_v39 = vmov 0.0|0.0  }
  0x7b   :  { %1563 = vmatprep.subr.bf16.mxu0 %v1562_v42 }
  0x7c   :  { %1369 = vmatmul.mubr.msk.f32.gmra.mrb[6].mxu1 %vm137_vm1, %v128_v19 }
  0x7d   :  { %1537 = vmatpush3.bf16.msra.mxu1 %v1534_v20 }
  0x7e   :  { %1539 = vmatprep.subr.bf16.mxu1 %v1538_v23  ;;  %1565 = vmatpush3.bf16.msra.mxu0 %v1562_v42  ;;  %v1578_v42 = vpack.c.bf16 %v620_v41, %v619_v40  ;;  %v715_v40 = vld [vmem:[%s2457_s10 + $0x38] sm:$0xf] }
  0x7f   :  { %1567 = vmatprep.subr.bf16.mxu0 %v1566_v45 }
  0x81   :  { %1541 = vmatpush3.bf16.msra.mxu1 %v1538_v23 }
  0x82   :  { %1543 = vmatprep.subr.bf16.mxu1 %v1542_v26  ;;  %1569 = vmatpush3.bf16.msra.mxu0 %v1566_v45  ;;  %v1581_v45 = vpack.c.bf16 %v622_v44, %v621_v43  ;;  %v818_v43 = vld [vmem:[%s2461_s14] sm:$0x77] }
  0x83   :  { %1571 = vmatprep.subr.bf16.mxu0 %v1570_v9  ;;  %v820_v44 = vcombine.high %v818_v43, %v818_v43 }
  0x85   :  { %1545 = vmatpush3.bf16.msra.mxu1 %v1542_v26 }
  0x86   :  { %1547 = vmatprep.subr.bf16.mxu1 %v1546_v29  ;;  %1573 = vmatpush3.bf16.msra.mxu0 %v1570_v9 }
  0x87   :  { %1437 = vmatprep.subr.msk.mxu0 %vm484_vm3, %v451_v10 }
  0x89   :  { %1549 = vmatpush3.bf16.msra.mxu1 %v1546_v29 }
  0x8a   :  { %1399 = vmatprep.subr.mxu1 %v293_v30  ;;  %1438 = vmatpush3.msk.msra.mxu0 %vm484_vm3, %v451_v10 }
  0x8b   :  { %1574 = vmatprep.subr.bf16.mxu0 %v1836_v39 }
  0x8d   :  { %1400 = vmatpush3.msra.mxu1 %v293_v30 }
  0x8e   :  { %1589 = vmatprep.subr.bf16.mxu1 %v1836_v39 }
 0x143   :  { %v1361_v47 = vpop.f32.mrb[0].mxu1 }
 0x144   :  { %v238_v48 = vadd.f32 %v1361_v47, %v1225_v46  ;;  %v232_v49 = vpop.f32.mrb[1].mxu1  ;;  %v624_v47 = vld [vmem:[%s2455_s8 + $0x38] sm:$0xff] }
 0x145   :  { %v233_v50 = vadd.f32 %v1225_v46, %v232_v49  ;;  %v625_v49 = vld [vmem:[%s2455_s8 + $0x40] sm:$0xff] }
 0x146   :  { %v272_v53 = vmax.f32 %v238_v48, 0.0 }
 0x147   :  { %v271_v51 = vmax.f32 %v233_v50, 0.0  ;;  %v1364_v52 = vpop.f32.mrb[2].mxu1  ;;  %v626_v50 = vld [vmem:[%s2455_s8 + $0x48] sm:$0xff] }
 0x148   :  { %v248_v54 = vadd.f32 %v1364_v52, %v1225_v46  ;;  %v242_v55 = vpop.f32.mrb[3].mxu1  ;;  %v1838_v52 = vmov 0.0  }
 0x149   :  { %v243_v56 = vadd.f32 %v1225_v46, %v242_v55  ;;  %1401 = vmatprep.mubr.msk.f32.mxu1 %vm301_vm2, %v271_v51  ;;  %v1587_v51 = vpack.c.bf16 %v626_v50, %v625_v49  ;;  %v710_v55 = vld [vmem:[%s2457_s10 + $0x10] sm:$0xff] }
 0x14a   :  { %1402 = vmatmul.mubr.msk.f32.vlgmr.msra.gmra.mrb[8].mxu1 %vm301_vm2, %v272_v53  ;;  %v274_v59 = vmax.f32 %v248_v54, 0.0  ;;  %v708_v53 = vld [vmem:[%s2457_s10] sm:$0xff]  ;;  %v709_v54 = vld [vmem:[%s2457_s10 + $0x8] sm:$0xff] }
 0x14b   :  { %v273_v57 = vmax.f32 %v243_v56, 0.0  ;;  %v1367_v58 = vpop.f32.mrb[4].mxu1  ;;  %v1590_v56 = vpack.c.bf16 %v709_v54, %v708_v53  ;;  %v801_v54 = vld [vmem:[%s2459_s12] sm:$0xff] }
 0x14c   :  { %v258_v60 = vadd.f32 %v1367_v58, %v1225_v46  ;;  %v252_v61 = vpop.f32.mrb[5].mxu1 }
 0x14d   :  { %v253_v62 = vadd.f32 %v1225_v46, %v252_v61  ;;  %1404 = vmatprep.mubr.msk.f32.mxu1 %vm301_vm2, %v273_v57  ;;  %v711_v57 = vld [vmem:[%s2457_s10 + $0x18] sm:$0xff]  ;;  %1591 = vmatpush3.bf16.msra.mxu1 %v1590_v56  ;;  %v806_v56 = vld [vmem:[%s2459_s12 + $0x28] sm:$0xff] }
 0x14e   :  { %1405 = vmatmul.mubr.msk.f32.gmra.mrb[10].mxu1 %vm301_vm2, %v274_v59  ;;  %v276_v1 = vmax.f32 %v258_v60, 0.0  ;;  %v1593_v58 = vpack.c.bf16 %v711_v57, %v710_v55  ;;  %1592 = vmatprep.subr.bf16.mxu1 %v1836_v39  ;;  %v712_v59 = vld [vmem:[%s2457_s10 + $0x20] sm:$0xff]  ;;  %v713_v60 = vld [vmem:[%s2457_s10 + $0x28] sm:$0xff]  ;;  %v803_v55 = vld [vmem:[%s2459_s12 + $0x10] sm:$0xff] }
 0x14f   :  { %v275_v63 = vmax.f32 %v253_v62, 0.0  ;;  %v1370_v0 = vpop.f32.mrb[6].mxu1  ;;  %v1596_v61 = vpack.c.bf16 %v713_v60, %v712_v59  ;;  %v1244_v62 = vld [vmem:[#allocation7] ss:$0 sm:$0xff]  ;;  %v808_v57 = vld [vmem:[%s2459_s12 + $0x38] sm:$0xff]  ;;  %v1604_v59 = vpack.c.bf16 %v803_v55, %v801_v54 }
 0x150   :  { %v268_v2 = vadd.f32 %v1370_v0, %v1225_v46  ;;  %v262_v3 = vpop.f32.mrb[7].mxu1  ;;  %v1606_v60 = vpack.c.bf16 %v808_v57, %v806_v56  ;;  %v1019_v55 = vld [vmem:[%s2462_s15 + $0xc0] sm:$0xff]  ;;  %v1103_v57 = vld [vmem:[%s2464_s17 + $0x8] sm:$0xff] }
 0x151   :  { %v263_v4 = vadd.f32 %v1225_v46, %v262_v3  ;;  %1407 = vmatprep.mubr.msk.f32.mxu1 %vm301_vm2, %v275_v63  ;;  %v623_v46 = vld [vmem:[%s2455_s8 + $0x30] sm:$0xff]  ;;  %1594 = vmatpush3.bf16.msra.mxu1 %v1593_v58  ;;  %v817_v58 = vld [vmem:[%s2478_s1] sm:$0xff] }
 0x152   :  { %1408 = vmatmul.mubr.msk.f32.gmra.mrb[12].mxu1 %vm301_vm2, %v276_v1  ;;  %v278_v6 = vmax.f32 %v268_v2, 0.0  ;;  %v1584_v48 = vpack.c.bf16 %v624_v47, %v623_v46  ;;  %1595 = vmatprep.subr.bf16.mxu1 %v1836_v39  ;;  %v802_v47 = vld [vmem:[%s2459_s12 + $0x8] sm:$0xff]  ;;  %v1102_v56 = vld [vmem:[%s2464_s17] sm:$0xff] }
 0x153   :  { %v277_v5 = vmax.f32 %v263_v4, 0.0 }
 0x155   :  { %1410 = vmatprep.mubr.msk.f32.mxu1 %vm301_vm2, %v277_v5  ;;  %1597 = vmatpush3.bf16.msra.mxu1 %v1596_v61  ;;  %v805_v61 = vld [vmem:[%s2459_s12 + $0x20] sm:$0xff] }
 0x156   :  { %1411 = vmatmul.mubr.msk.f32.gmra.mrb[14].mxu1 %vm301_vm2, %v278_v6  ;;  %1598 = vmatprep.subr.bf16.mxu1 %v1836_v39 }
 0x157   :  { %1490 = vmatprep.mubr.msk.f32.mxu1 %vm1837_vm5, %v1838_v52 }
 0x21d   :  { %v1403_v12 = vpop.f32.mrb[8].mxu1 }
 0x21e   :  { %v398_v13 = vadd.f32 %v1403_v12, %v1235_v11  ;;  %v392_v14 = vpop.f32.mrb[9].mxu1 }
 0x21f   :  { %v393_v15 = vadd.f32 %v1235_v11, %v392_v14 }
 0x220   :  { %v432_v18 = vmax.f32 %v398_v13, 0.0 }
 0x221   :  { %v431_v16 = vmax.f32 %v393_v15, 0.0  ;;  %v1406_v17 = vpop.f32.mrb[10].mxu1 }
 0x222   :  { %v408_v19 = vadd.f32 %v1406_v17, %v1235_v11  ;;  %v402_v20 = vpop.f32.mrb[11].mxu1 }
 0x223   :  { %v403_v21 = vadd.f32 %v1235_v11, %v402_v20  ;;  %1439 = vmatprep.mubr.msk.f32.mxu0 %vm459_vm4, %v431_v16 }
 0x224   :  { %1440 = vmatmul.mubr.msk.f32.vlgmr.msra.gmra.mrb[0].mxu0 %vm459_vm4, %v432_v18  ;;  %v434_v24 = vmax.f32 %v408_v19, 0.0 }
 0x225   :  { %v433_v22 = vmax.f32 %v403_v21, 0.0  ;;  %v1409_v23 = vpop.f32.mrb[12].mxu1  ;;  %1576 = vmatpush3.bf16.msra.mxu0 %v1575_v38  ;;  %v714_v38 = vld [vmem:[%s2457_s10 + $0x30] sm:$0xff] }
 0x226   :  { %v418_v25 = vadd.f32 %v1409_v23, %v1235_v11  ;;  %v412_v26 = vpop.f32.mrb[13].mxu1  ;;  %1577 = vmatprep.subr.bf16.mxu0 %v1836_v39  ;;  %v1599_v41 = vpack.c.bf16 %v715_v40, %v714_v38  ;;  %v1013_v40 = vld [vmem:[%s2462_s15 + $0x90] sm:$0xff] }
 0x227   :  { %v413_v27 = vadd.f32 %v1235_v11, %v412_v26  ;;  %1442 = vmatprep.mubr.msk.f32.mxu0 %vm459_vm4, %v433_v22 }
 0x228   :  { %1443 = vmatmul.mubr.msk.f32.gmra.mrb[2].mxu0 %vm459_vm4, %v434_v24  ;;  %v436_v30 = vmax.f32 %v418_v25, 0.0  ;;  %1601 = vmatpush3.bf16.msk.msra.mxu1 %vm2218_vm8, %v1599_v41  ;;  %v1014_v41 = vld [vmem:[%s2462_s15 + $0x98] sm:$0xff] }
 0x229   :  { %v435_v28 = vmax.f32 %v413_v27, 0.0  ;;  %v1412_v29 = vpop.f32.mrb[14].mxu1  ;;  %1579 = vmatpush3.bf16.msra.mxu0 %v1578_v42  ;;  %1259 = vmatprep.subr.msk.mxu1 %vm162_vm0, %v820_v44  ;;  %v1648_v42 = vpack.c.bf16 %v1014_v41, %v1013_v40  ;;  %v1016_v44 = vld [vmem:[%s2462_s15 + $0xa8] sm:$0xff] }
 0x22a   :  { %v428_v31 = vadd.f32 %v1412_v29, %v1235_v11  ;;  %v422_v32 = vpop.f32.mrb[15].mxu1  ;;  %1580 = vmatprep.subr.bf16.mxu0 %v1836_v39 }
 0x22b   :  { %v423_v33 = vadd.f32 %v1235_v11, %v422_v32  ;;  %1445 = vmatprep.mubr.msk.f32.mxu0 %vm459_vm4, %v435_v28 }
 0x22c   :  { %1446 = vmatmul.mubr.msk.f32.gmra.mrb[4].mxu0 %vm459_vm4, %v436_v30  ;;  %v438_v35 = vmax.f32 %v428_v31, 0.0 }
 0x22d   :  { %v437_v34 = vmax.f32 %v423_v33, 0.0  ;;  %1582 = vmatpush3.bf16.msra.mxu0 %v1581_v45  ;;  %v1254_v45 = vld [vmem:[#allocation8] ss:$0 sm:$0xff] }
 0x22e   :  { %1583 = vmatprep.subr.bf16.mxu0 %v1836_v39 }
 0x22f   :  { %1448 = vmatprep.mubr.msk.f32.mxu0 %vm459_vm4, %v437_v34 }
 0x230   :  { %1449 = vmatmul.mubr.msk.f32.gmra.mrb[6].mxu0 %vm459_vm4, %v438_v35 }
 0x231   :  { %1585 = vmatpush3.bf16.msra.mxu0 %v1584_v48  ;;  %1471 = vmatprep.mubr.msk.f32.mxu0 %vm1837_vm5, %v1838_v52  ;;  %v804_v48 = vld [vmem:[%s2459_s12 + $0x18] sm:$0xff] }
 0x232   :  { %1586 = vmatprep.subr.bf16.mxu0 %v1836_v39  ;;  %v1602_v53 = vpack.c.bf16 %v804_v48, %v802_v47 }
 0x235   :  { %1588 = vmatpush3.bf16.msra.mxu0 %v1587_v51 }
 0x236   :  { %1620 = vmatprep.subr.bf16.mxu0 %v1836_v39 }
 0x2f7   :  { %v1441_v63 = vpop.f32.mrb[0].mxu0 }
 0x2f8   :  { %v560_v0 = vadd.f32 %v1441_v63, %v1244_v62  ;;  %v554_v1 = vpop.f32.mrb[1].mxu0  ;;  %v810_v63 = vld [vmem:[%s2459_s12 + $0x48] sm:$0xff] }
 0x2f9   :  { %v555_v2 = vadd.f32 %v1244_v62, %v554_v1 }
 0x2fa   :  { %v594_v3 = vmax.f32 %v560_v0, 0.0  ;;  %v812_v0 = vld [vmem:[%s2459_s12 + $0x58] sm:$0xff] }
 0x2fb   :  { %v593_v4 = vmax.f32 %v555_v2, 0.0  ;;  %v1444_v5 = vpop.f32.mrb[2].mxu0  ;;  %v1610_v2 = vpack.c.bf16 %v812_v0, %v810_v63  ;;  %v1107_v63 = vld [vmem:[%s2464_s17 + $0x28] sm:$0xff] }
 0x2fc   :  { %v603_v6 = vsel %vm601_vm6, %v594_v3, 0.0  ;;  %v570_v7 = vadd.f32 %v1444_v5, %v1244_v62  ;;  %v564_v8 = vpop.f32.mrb[3].mxu0  ;;  %v809_v3 = vld [vmem:[%s2459_s12 + $0x40] sm:$0xff] }
 0x2fd   :  { %v602_v9 = vsel %vm601_vm6, %v593_v4, 0.0  ;;  %v565_v10 = vadd.f32 %v1244_v62, %v564_v8  ;;  %v811_v4 = vld [vmem:[%s2459_s12 + $0x50] sm:$0xff] }
 0x2fe   :  { %v604_v11 = vadd.f32 %v603_v6, %v602_v9  ;;  %v596_v12 = vmax.f32 %v570_v7, 0.0  ;;  %v1612_v5 = vpack.c.bf16 %v811_v4, %v809_v3  ;;  %v814_v6 = vld [vmem:[%s2459_s12 + $0x68] sm:$0xff]  ;;  %v816_v7 = vld [vmem:[%s2459_s12 + $0x78] sm:$0xf]  ;;  %v813_v9 = vld [vmem:[%s2459_s12 + $0x60] sm:$0xff] }
 0x2ff   :  { %v595_v13 = vmax.f32 %v565_v10, 0.0  ;;  %v1447_v14 = vpop.f32.mrb[4].mxu0  ;;  %v1614_v8 = vpack.c.bf16 %v816_v7, %v814_v6  ;;  %v815_v10 = vld [vmem:[%s2459_s12 + $0x70] sm:$0xf]  ;;  %v1110_v4 = vld [vmem:[%s2464_s17 + $0x40] sm:$0xff]  ;;  %v981_v7 = vlaneseq }
 0x300   :  { %v580_v15 = vadd.f32 %v1447_v14, %v1244_v62  ;;  %v574_v16 = vpop.f32.mrb[5].mxu0  ;;  %v607_v20 = vsel %vm601_vm6, %v596_v12, 0.0  ;;  %v995_v12 = vld [vmem:[%s2462_s15] sm:$0xff]  ;;  %v997_v14 = vld [vmem:[%s2462_s15 + $0x10] sm:$0xff] }
 0x301   :  { %v605_v17 = vsel %vm601_vm6, %v595_v13, 0.0  ;;  %v575_v18 = vadd.f32 %v1244_v62, %v574_v16  ;;  %v996_v13 = vld [vmem:[%s2462_s15 + $0x8] sm:$0xff]  ;;  %v998_v16 = vld [vmem:[%s2462_s15 + $0x18] sm:$0xff] }
 0x302   :  { %v606_v19 = vadd.f32 %v605_v17, %v604_v11  ;;  %v598_v21 = vmax.f32 %v580_v15, 0.0  ;;  %v1617_v11 = vpack.c.bf16 %v815_v10, %v813_v9  ;;  %v1621_v15 = vpack.c.bf16 %v996_v13, %v995_v12  ;;  %v979_v10 = vld [vmem:[%s2460_s13] sm:$0x3] }
 0x303   :  { %v597_v22 = vmax.f32 %v575_v18, 0.0  ;;  %v1450_v23 = vpop.f32.mrb[6].mxu0  ;;  %v1624_v17 = vpack.c.bf16 %v998_v16, %v997_v14  ;;  %v999_v18 = vld [vmem:[%s2462_s15 + $0x20] sm:$0xff] }
 0x304   :  { %v608_v24 = vadd.f32 %v607_v20, %v606_v19  ;;  %v590_v25 = vadd.f32 %v1450_v23, %v1244_v62  ;;  %v584_v26 = vpop.f32.mrb[7].mxu0  ;;  %v611_v30 = vsel %vm601_vm6, %v598_v21, 0.0  ;;  %v1000_v19 = vld [vmem:[%s2462_s15 + $0x28] sm:$0xff]  ;;  %v1001_v21 = vld [vmem:[%s2462_s15 + $0x30] sm:$0xff] }
 0x305   :  { %v609_v27 = vsel %vm601_vm6, %v597_v22, 0.0  ;;  %v585_v28 = vadd.f32 %v1244_v62, %v584_v26  ;;  %v807_v62 = vld [vmem:[%s2459_s12 + $0x30] sm:$0xff]  ;;  %v1627_v20 = vpack.c.bf16 %v1000_v19, %v999_v18  ;;  %v1002_v22 = vld [vmem:[%s2462_s15 + $0x38] sm:$0xff] }
 0x306   :  { %v610_v29 = vadd.f32 %v609_v27, %v608_v24  ;;  %v600_v31 = vmax.f32 %v590_v25, 0.0  ;;  %v1608_v1 = vpack.c.bf16 %v807_v62, %v805_v61  ;;  %v1630_v23 = vpack.c.bf16 %v1002_v22, %v1001_v21  ;;  %v1003_v24 = vld [vmem:[%s2462_s15 + $0x40] sm:$0xff]  ;;  %v1004_v25 = vld [vmem:[%s2462_s15 + $0x48] sm:$0xff]  ;;  %v1005_v27 = vld [vmem:[%s2462_s15 + $0x50] sm:$0xff] }
 0x307   :  { %v599_v32 = vmax.f32 %v585_v28, 0.0  ;;  %v1633_v26 = vpack.c.bf16 %v1004_v25, %v1003_v24  ;;  %v1006_v28 = vld [vmem:[%s2462_s15 + $0x58] sm:$0xff]  ;;  %v1106_v62 = vld [vmem:[%s2464_s17 + $0x20] sm:$0xff] }
 0x308   :  { %v612_v33 = vadd.f32 %v611_v30, %v610_v29  ;;  %v615_v36 = vsel %vm601_vm6, %v600_v31, 0.0  ;;  %v1636_v29 = vpack.c.bf16 %v1006_v28, %v1005_v27  ;;  %v1007_v30 = vld [vmem:[%s2462_s15 + $0x60] sm:$0xff]  ;;  %v1008_v31 = vld [vmem:[%s2462_s15 + $0x68] sm:$0xff]  ;;  %v1663_v0 = vpack.c.bf16 %v1107_v63, %v1106_v62 }
 0x309   :  { %v613_v34 = vsel %vm601_vm6, %v599_v32, 0.0  ;;  %v1639_v32 = vpack.c.bf16 %v1008_v31, %v1007_v30  ;;  %v1114_v22 = vld [vmem:[%s2464_s17 + $0x60] sm:$0xf] }
 0x30a   :  { %v614_v35 = vadd.f32 %v613_v34, %v612_v33  ;;  %v1009_v33 = vld [vmem:[%s2462_s15 + $0x70] sm:$0xff]  ;;  %v1010_v34 = vld [vmem:[%s2462_s15 + $0x78] sm:$0xff] }
 0x30c   :  { %v616_v37 = vadd.f32 %v615_v36, %v614_v35  ;;  %v1642_v35 = vpack.c.bf16 %v1010_v34, %v1009_v33  ;;  %v1011_v36 = vld [vmem:[%s2462_s15 + $0x80] sm:$0xff] }
 0x30e   :  { %1472 = vmatmul.mubr.msk.f32.vlgmr.msra.gmra.mrb[8].mxu0 %vm601_vm6, %v616_v37  ;;  %v1012_v37 = vld [vmem:[%s2462_s15 + $0x88] sm:$0xff] }
 0x30f   :  { %1622 = vmatpush1.bf16.msra.mxu0 %v1621_v15  ;;  %v1645_v38 = vpack.c.bf16 %v1012_v37, %v1011_v36 }
 0x310   :  { %1623 = vmatprep.subr.bf16.mxu0 %v1836_v39 }
 0x313   :  { %1625 = vmatpush1.bf16.msra.mxu0 %v1624_v17 }
 0x314   :  { %1626 = vmatprep.subr.bf16.mxu0 %v1836_v39 }
 0x317   :  { %1628 = vmatpush1.bf16.msra.mxu0 %v1627_v20  ;;  %v1113_v20 = vld [vmem:[%s2464_s17 + $0x58] sm:$0xff] }
 0x318   :  { %1629 = vmatprep.subr.bf16.mxu0 %v1836_v39 }
 0x31b   :  { %1631 = vmatpush1.bf16.msra.mxu0 %v1630_v23  ;;  %v1265_v23 = vld [vmem:[%s2463_s16] ss:$0 sm:$0xff]  ;;  %s1840_s16 = smov [#allocation11]  }
 0x31c   :  { %1632 = vmatprep.subr.bf16.mxu0 %v1836_v39 }
 0x31f   :  { %1634 = vmatpush1.bf16.msra.mxu0 %v1633_v26 }
 0x320   :  { %1635 = vmatprep.subr.bf16.mxu0 %v1836_v39 }
 0x323   :  { %1637 = vmatpush1.bf16.msra.mxu0 %v1636_v29 }
 0x324   :  { %1638 = vmatprep.subr.bf16.mxu0 %v1836_v39 }
 0x327   :  { %1640 = vmatpush1.bf16.msra.mxu0 %v1639_v32 }
 0x328   :  { %1641 = vmatprep.subr.bf16.mxu0 %v1836_v39 }
 0x32b   :  { %1643 = vmatpush1.bf16.msra.mxu0 %v1642_v35 }
 0x32c   :  { %1644 = vmatprep.subr.bf16.mxu0 %v1836_v39 }
 0x32f   :  { %1646 = vmatpush1.bf16.msra.mxu0 %v1645_v38 }
 0x330   :  { %1647 = vmatprep.subr.bf16.mxu0 %v1836_v39 }
 0x333   :  { %1649 = vmatpush1.bf16.msra.mxu0 %v1648_v42 }
 0x334   :  { %1650 = vmatprep.subr.bf16.mxu0 %v1836_v39 }
 0x3e1   :  { %v703_v46 = vpop.f32.mrb[8].mxu0 }
 0x3e2   :  { %v704_v49 = vadd.f32 %v1254_v45, %v703_v46  ;;  %v1473_v50 = vpop.f32.mrb[9].mxu0  ;;  %v1256_v46 = vld [vmem:[#allocation10] ss:$0 sm:$0xff] }
 0x3e4   :  { %v707_v51 = vmax.f32 %v704_v49, 0.0 }
 0x3e6   :  { %1491 = vmatmul.mubr.msk.f32.vlgmr.msra.gmra.mrb[16].mxu1 %vm723_vm9, %v707_v51  ;;  %v1017_v51 = vld [vmem:[%s2462_s15 + $0xb0] sm:$0xff] }
 0x3e7   :  { %1260 = vmatpush1.msk.msra.mxu1 %vm162_vm0, %v818_v43  ;;  %892 = vmatprep.mubr.f32.mxu1 %v1838_v52  ;;  %v1015_v43 = vld [vmem:[%s2462_s15 + $0xa0] sm:$0xff] }
 0x3e8   :  { %1603 = vmatprep.subr.bf16.mxu1 %v1602_v53  ;;  %v1651_v45 = vpack.c.bf16 %v1016_v44, %v1015_v43  ;;  %v1018_v53 = vld [vmem:[%s2462_s15 + $0xb8] sm:$0xff] }
 0x3e9   :  { %v1654_v54 = vpack.c.bf16 %v1018_v53, %v1017_v51 }
 0x3ea   :  { %1261 = vmatmul.mubr.msk.f32.vlgmr.msra.gmra.mrb[18].mxu1 %vm137_vm1, %v817_v58  ;;  %1652 = vmatpush1.bf16.msra.mxu0 %v1651_v45  ;;  %v1104_v58 = vld [vmem:[%s2464_s17 + $0x10] sm:$0xff] }
 0x3eb   :  { %1605 = vmatpush1.bf16.msra.mxu1 %v1604_v59  ;;  %972 = vmatprep.mubr.f32.mxu1 %v1838_v52  ;;  %v1657_v59 = vpack.c.bf16 %v1103_v57, %v1102_v56 }
 0x3ec   :  { %1607 = vmatprep.subr.bf16.mxu1 %v1606_v60  ;;  %1653 = vmatprep.subr.bf16.mxu0 %v1836_v39  ;;  %v1105_v60 = vld [vmem:[%s2464_s17 + $0x18] sm:$0xff] }
 0x3ed   :  { %v1660_v61 = vpack.c.bf16 %v1105_v60, %v1104_v58 }
 0x3ee   :  { %1655 = vmatpush1.bf16.msra.mxu0 %v1654_v54 }
 0x3ef   :  { %1609 = vmatpush1.bf16.msra.mxu1 %v1608_v1  ;;  %1079 = vmatprep.subr.mxu0 %v1838_v52  ;;  %v1108_v1 = vld [vmem:[%s2464_s17 + $0x30] sm:$0xff] }
 0x3f0   :  { %1611 = vmatprep.subr.bf16.mxu1 %v1610_v2  ;;  %v1109_v2 = vld [vmem:[%s2464_s17 + $0x38] sm:$0xff] }
 0x3f1   :  { %v1666_v3 = vpack.c.bf16 %v1109_v2, %v1108_v1 }
 0x3f2   :  { %1080 = vmatpush1.msra.mxu0 %v1019_v55 }
 0x3f3   :  { %1613 = vmatpush1.bf16.msra.mxu1 %v1612_v5  ;;  %v1111_v5 = vld [vmem:[%s2464_s17 + $0x48] sm:$0xff] }
 0x3f4   :  { %1616 = vmatprep.subr.msk.bf16.mxu1 %vm2218_vm8, %v1614_v8  ;;  %v1669_v6 = vpack.c.bf16 %v1111_v5, %v1110_v4  ;;  %v982_v8 = vshrl.u32 %v981_v7, 7 }
 0x3f6   :  { %v983_v9 = vsub.s32 0, %v982_v8 }
 0x3f7   :  { %1619 = vmatpush1.bf16.msk.msra.mxu1 %vm2218_vm8, %v1617_v11  ;;  %v987_v11 = vsub.s32 1, %v982_v8 }
 0x3f8   :  { %1656 = vmatprep.subr.bf16.mxu1 %v1836_v39  ;;  %v984_v12 = vrot.slane %v979_v10, %v983_v9 }
 0x3f9   :  { %v988_v13 = vrot.slane %v979_v10, %v987_v11 }
 0x4b9   :  { %v796_v47 = vpop.f32.mrb[16].mxu1 }
 0x4ba   :  { %v797_v48 = vadd.f32 %v1256_v46, %v796_v47  ;;  %v1492_v49 = vpop.f32.mrb[17].mxu1 }
 0x4bc   :  { %v800_v50 = vmax.f32 %v797_v48, 0.0 }
 0x4be   :  { %1264 = vmatmul.mubr.msk.f32.vlgmr.msra.gmra.mrb[18].mxu1 %vm723_vm9, %v800_v50 }
 0x4bf   :  { %1519 = vmatprep.mubr.msk.f32.mxu1 %vm1837_vm5, %v1838_v52  ;;  %1658 = vmatpush3.bf16.msra.mxu1 %v1657_v59 }
 0x4c0   :  { %1659 = vmatprep.subr.bf16.mxu1 %v1836_v39 }
 0x4c3   :  { %1661 = vmatpush3.bf16.msra.mxu1 %v1660_v61 }
 0x4c4   :  { %1662 = vmatprep.subr.bf16.mxu1 %v1836_v39 }
 0x4c7   :  { %1664 = vmatpush3.bf16.msra.mxu1 %v1663_v0 }
 0x4c8   :  { %1665 = vmatprep.subr.bf16.mxu1 %v1836_v39 }
 0x4cb   :  { %1667 = vmatpush3.bf16.msra.mxu1 %v1666_v3 }
 0x4cc   :  { %1668 = vmatprep.subr.bf16.mxu1 %v1836_v39 }
 0x4cf   :  { %1670 = vmatpush3.bf16.msra.mxu1 %v1669_v6 }
 0x4d0   :  { %1671 = vmatprep.subr.bf16.mxu1 %v1836_v39  ;;  %v1112_v39 = vld [vmem:[%s2464_s17 + $0x50] sm:$0xff]  ;;  %s1214_s17 = sshll.u32 %s1840_s16, 4  ;;  %s1215_s17 = int_to_ptr.vmem [resolvable:$true] %s1214_s17 }
 0x4d1   :  { %v1672_v21 = vpack.c.bf16 %v1113_v20, %v1112_v39  ;;  %s1801_s24 = scalar_lea.vmem %s1215_s17, 128  ;;  %p1806_p13 = scmp.lt.s32.totalorder %s1215_s17, %s1215_s17 }
 0x4d2   :  { %p1802_p12 = scmp.ne.s32.totalorder %s1215_s17, %s1801_s24  ;;  %p1807_p0 = scmp.lt.s32.totalorder %s1801_s24, %s1801_s24 }
 0x4d3   :  { %1673 = vmatpush3.bf16.msra.mxu1 %v1672_v21 }
 0x4d4   :  { %1517 = vmatprep.subr.mxu1 %v1838_v52  ;;  %v1267_v52 = vld [vmem:[%s2465_s18] ss:$0 sm:$0xff]  ;;  %p1808_p1 = por %p1807_p0, %p1806_p13 }
 0x4d6   :  { %p1809_p2 = pnand %p1808_p1, %p1802_p12 }
 0x4d7   :  { %1518 = vmatpush3.msk.msra.mxu1 %vm484_vm3, %v1114_v22 }
 0x591   :  { %v974_v14 = vpop.f32.mrb[18].mxu1 }
 0x592   :  { %v991_v15 = vadd.f32 %v984_v12, %v974_v14  ;;  %v976_v16 = vpop.f32.mrb[19].mxu1 }
 0x593   :  { %v992_v17 = vadd.f32 %v988_v13, %v976_v16 }
 0x594   :  { %v993_v19 = vmax.f32 %v991_v15, 0.0 }
 0x595   :  { %v994_v18 = vmax.f32 %v992_v17, 0.0 }
 0x597   :  { %1266 = vmatprep.mubr.msk.f32.mxu0 %vm1027_vm10, %v994_v18 }
 0x598   :  { %1096 = vmatmul.mubr.f32.vlgmr.msra.gmra.mrb[10].mxu0 %v993_v19 }
 0x66b   :  { %v1097_v24 = vpop.f32.mrb[10].mxu0 }
 0x66c   :  { %v1098_v25 = vadd.f32 %v1265_v23, %v1097_v24  ;;  %v1099_v26 = vpop.f32.mrb[11].mxu0 }
 0x66e   :  { %v1101_v27 = vmax.f32 %v1098_v25, 0.0 }
 0x670   :  { %1520 = vmatmul.mubr.msk.f32.vlgmr.msra.gmra.mrb[20].mxu1 %vm459_vm4, %v1101_v27 }
 0x743   :  { %v1194_v28 = vpop.f32.mrb[20].mxu1 }
 0x744   :  { %v1195_v29 = vadd.f32 %v1267_v52, %v1194_v28  ;;  %v1521_v30 = vpop.f32.mrb[21].mxu1 }
 0x746   :  { %1198 = vmax.xlane.f32.xlu0 %v1195_v29 }
 0x7d3   :  { %v1199_v31 = vpop.xlane.xlu0 %1198 }
 0x7d4   :  { %v1200_v32 = vsub.f32 %v1195_v29, %v1199_v31 }
 0x7d6   :  { %v1201_v33 = vmul.f32 1.442695, %v1200_v32 }
 0x7d8   :  { %1687 = vpow2.f32 %v1201_v33 }
 0x7e2   :  { %v1688_v34 = vpop.eup %1687 }
 0x7e3   :  { %1203 = vadd.xlane.f32.xlu0 %v1688_v34 }
 0x870   :  { %v1204_v35 = vpop.xlane.xlu0 %1203 }
 0x871   :  { %1689 = vrcp.f32 %v1204_v35 }
 0x87b   :  { %v1690_v36 = vpop.eup %1689 }
 0x87c   :  { %v1206_v37 = vmul.f32 %v1690_v36, %v1688_v34 }
 0x87e   :  { %1207 = vst [vmem:[#allocation11] sm:$0xff] %v1206_v37 }
 0x87f   :  { %1812 = shalt.err (!%p1809_p2)
}
 0x880   :  { %s1813_s25 = scalar_lea.hbm %s2466_s19, 128 }
 0x881   :  { %p1814_p3 = scmp.ne.s32.totalorder %s2466_s19, %s1813_s25  ;;  %p1817_p4 = scmp.lt.u32.totalorder %s1813_s25, %s2466_s19 }
 0x883   :  { %p1819_p5 = pnand %p1817_p4, %p1814_p3 }
 0x885   :  { %1822 = shalt.err (!%p1819_p5)
}
 0x886   :  { %1217 = dma.vmem_to_hbm [thread:$0]  %s1215_s17, 128, %s2466_s19, [#allocation4]  }
 0x887   :  { %1829 = dma.done.wait [#allocation4], 128  }
 0x888   :  { %1830 = vsyncadd [#allocation4], 4294967168 }
 0x889   :  { %1221 = vsyncpa [#allocation3], 1 }
 0x88a   :  { %1222 = vsyncpa [#allocation6], 1 }
 0x88b   :  { %1223 = vsyncpa [#allocation9], 1 }
 0x88c   :  { %1224 = vsyncpa [#allocation4], 1 }

</bundles_post_ra>
